<compile_context>
chip_gen: v7x
topology: tpu7x:2x2x1
jax: 0.10.0
libtpu: 0.0.40
codegen_flags: <defaults>
</compile_context>

<pallas_src>
import jax
import jax.numpy as jnp
from jax import lax
from jax.experimental import pallas as pl
from jax.experimental.pallas import tpu as pltpu


def _round_up(v, m):
    return ((v + m - 1) // m) * m


def _make_sage_kernel(tk, xw_resident):
    """out[i,:] = d[i] * sum_k adj[i,k] * xw_scaled[k,:] + bias."""

    def kernel(adj_ref, xw_ref, d_ref, b_ref, o_ref):
        k = pl.program_id(1)

        @pl.when(k == 0)
        def _init():
            o_ref[...] = jnp.zeros_like(o_ref)

        if xw_resident:
            start = pl.multiple_of(k * tk, tk)
            xw_blk = xw_ref[pl.ds(start, tk), :]
        else:
            xw_blk = xw_ref[...]

        # int8 0/1 adjacency -> bf16 on the VPU (hidden under the adj DMA),
        # then bf16 x bf16 -> f32 accumulate on the MXU, directly into o_ref
        # (f32 output block is resident across the k axis).
        a = adj_ref[...].astype(xw_blk.dtype)
        o_ref[...] += jnp.dot(a, xw_blk, preferred_element_type=jnp.float32)

        @pl.when(k == pl.num_programs(1) - 1)
        def _finalize():
            # Exact f32 row normalization + bias.
            o_ref[...] = o_ref[...] * d_ref[...] + b_ref[...]

    return kernel


def graphsage_mean_forward(x, edge_index, weight, bias):
    """GraphSAGE 'mean' aggregator forward.

    x:          [N, F_in]      float32 node features
    edge_index: [2, E]  int32  (src row 0, dst row 1)
    weight:     [F_out, F_in]  (PyTorch nn.Linear layout)
    bias:       [F_out]
    returns     [N, F_out]     float32
    """
    n, f_in = x.shape
    f_out = weight.shape[0]

    # --- tile selection ---------------------------------------------------------
    if n > 1024:
        tm, tk = 512, 1024          # adj tile 0.5 MiB int8; >=4 row tiles
        n_pad = _round_up(n, 1024)
    elif n > 256:
        tm, tk = 256, 512           # >=2 row tiles (keeps both v7x TCs busy)
        n_pad = _round_up(n, 512)
    else:
        tm = tk = 128
        n_pad = _round_up(n, 128)
    f_pad = _round_up(f_out, 128)   # lane-dense output; no extra padding beyond 128

    # --- adjacency: 0/1 int8, built directly into the padded buffer --------------
    src, dst = edge_index[0], edge_index[1]
    adj_p = jnp.zeros((n_pad, n_pad), dtype=jnp.int8).at[src, dst].set(1)

    # Degrees (torch.sum(adj, dim=0)); padded rows/cols are zero so they don't
    # perturb the sums.  Isolated nodes clamp to 0 instead of inf (intentional
    # deviation from literal torch deg**-0.5 NaN-poisoning).
    deg = jnp.sum(adj_p, axis=0, dtype=jnp.int32).astype(jnp.float32)   # [n_pad]
    d_inv_sqrt = jnp.where(deg > 0, lax.rsqrt(deg), 0.0)                # exact f32

    # --- fold linear outside; pre-scale xw rows by d_inv_sqrt (contraction side) -
    xw = x.astype(jnp.float32) @ weight.T.astype(jnp.float32)           # [N, F_out]
    xw_scaled = xw * d_inv_sqrt[:n, None]
    xw_p = (jnp.zeros((n_pad, f_pad), jnp.bfloat16)
            .at[:n, :f_out].set(xw_scaled.astype(jnp.bfloat16)))
    d_col = d_inv_sqrt[:, None]                                         # [n_pad, 1] f32
    b_p = jnp.zeros((1, f_pad), jnp.float32).at[0, :f_out].set(bias.astype(jnp.float32))

    # --- xw residency decision ----------------------------------------------------
    xw_bytes = n_pad * f_pad * 2
    xw_resident = xw_bytes <= (12 << 20)   # 2-buffered copy stays well under 32 MiB

    grid = (n_pad // tm, n_pad // tk)

    if xw_resident:
        xw_spec = pl.BlockSpec((n_pad, f_pad), lambda i, k: (0, 0))  # DMA'd once
        xw_traffic = xw_bytes
    else:
        xw_spec = pl.BlockSpec((tk, f_pad), lambda i, k: (k, 0))     # re-read per row tile
        xw_traffic = grid[0] * n_pad * f_pad * 2

    cost = pl.CostEstimate(
        flops=2 * n_pad * n_pad * f_pad,
        transcendentals=0,
        bytes_accessed=(n_pad * n_pad * 1        # adj (int8)
                        + xw_traffic             # xw (resident: once; else per row tile)
                        + n_pad * f_pad * 4      # output
                        + n_pad * 4              # d row scale
                        + f_pad * 4),            # bias
    )

    # VMEM budget (double-buffered) -> scoped-vmem limit with headroom, capped
    # safely below v7x's 64 MiB physical per-TC VMEM.
    vmem_need = (2 * tm * tk                                   # adj tiles (int8)
                 + 2 * tm * f_pad * 4                          # output/accumulator tiles
                 + 2 * (n_pad if xw_resident else tk) * f_pad * 2   # xw
                 + 2 * (tm * 4 + f_pad * 4))                   # d rows + bias
    vmem_limit = int(min(max(vmem_need + (4 << 20), 16 << 20), 48 << 20))

    out_p = pl.pallas_call(
        _make_sage_kernel(tk, xw_resident),
        out_shape=jax.ShapeDtypeStruct((n_pad, f_pad), jnp.float32),
        grid_spec=pltpu.PrefetchScalarGridSpec(
            num_scalar_prefetch=0,
            grid=grid,
            in_specs=[
                pl.BlockSpec((tm, tk), lambda i, k: (i, k)),     # adj tile (int8)
                xw_spec,                                          # xw (resident or per-k)
                pl.BlockSpec((tm, 1), lambda i, k: (i, 0)),       # d_inv_sqrt row tile
                pl.BlockSpec((1, f_pad), lambda i, k: (0, 0)),    # bias (constant)
            ],
            out_specs=pl.BlockSpec((tm, f_pad), lambda i, k: (i, 0)),
        ),
        compiler_params=pltpu.CompilerParams(
            dimension_semantics=("parallel", "arbitrary"),
            vmem_limit_bytes=vmem_limit,
        ),
        cost_estimate=cost,
    )(adj_p, xw_p, d_col, b_p)

    return out_p[:n, :f_out]


def _reference_quantized(x, edge_index, weight, bias):
    """Pure-JAX reference mirroring the kernel's quantization (bf16 xw only)."""
    n = x.shape[0]
    src, dst = edge_index[0], edge_index[1]
    adj = jnp.zeros((n, n), dtype=jnp.float32).at[src, dst].set(1.0)
    deg = jnp.sum(adj, axis=0)
    d = jnp.where(deg > 0, deg ** -0.5, 0.0)
    xw = x @ weight.T
    xw_q = (xw * d[:, None]).astype(jnp.bfloat16).astype(jnp.float32)
    return (adj @ xw_q) * d[:, None] + bias


def _reference_f32(x, edge_index, weight, bias):
    n = x.shape[0]
    src, dst = edge_index[0], edge_index[1]
    adj = jnp.zeros((n, n), dtype=jnp.float32).at[src, dst].set(1.0)
    deg = jnp.sum(adj, axis=0)
    d_inv_sqrt = jnp.where(deg > 0, deg ** -0.5, 0.0)
    adj_norm = d_inv_sqrt[:, None] * adj * d_inv_sqrt[None, :]
    return (adj_norm @ x) @ weight.T + bias


if __name__ == "__main__":
    key = jax.random.PRNGKey(0)
    k_x, k_w, k_b = jax.random.split(key, 3)

    N = 16           # number of graph nodes
    F_IN = 8         # in_features
    F_OUT = 32       # out_features

    x = jax.random.normal(k_x, (N, F_IN), dtype=jnp.float32)

    # Undirected ring graph + a couple of chords -> every node has degree >= 2.
    src_fwd = jnp.arange(N, dtype=jnp.int32)
    dst_fwd = (src_fwd + 1) % N
    chord_src = jnp.array([0, 4], dtype=jnp.int32)
    chord_dst = jnp.array([8, 12], dtype=jnp.int32)
    src = jnp.concatenate([src_fwd, dst_fwd, chord_src, chord_dst])
    dst = jnp.concatenate([dst_fwd, src_fwd, chord_dst, chord_src])
    edge_index = jnp.stack([src, dst], axis=0)  # [2, E]

    # Deterministic synthetic nn.Linear parameters (weight: [F_OUT, F_IN]).
    bound = 1.0 / (F_IN ** 0.5)
    weight = jax.random.uniform(k_w, (F_OUT, F_IN), jnp.float32, -bound, bound)
    bias = jax.random.uniform(k_b, (F_OUT,), jnp.float32, -bound, bound)

    out = graphsage_mean_forward(x, edge_index, weight, bias)
    out = jax.block_until_ready(out)
    assert out.shape == (N, F_OUT)

    # Exact-path check: adjacency/degree scaling are exact f32 in the kernel;
    # only xw carries bf16 quantization (mirrored in this reference).
    ref_q = _reference_quantized(x, edge_index, weight, bias)
    assert jnp.allclose(out, ref_q, atol=1e-4, rtol=1e-4)

    # Sanity check against the full-f32 PyTorch-equivalent forward.
    ref_f32 = _reference_f32(x, edge_index, weight, bias)
    assert jnp.allclose(out, ref_f32, atol=3e-2, rtol=3e-2)

    print("KERNEL_OK")
</pallas_src>

<mosaic_0001>
module attributes {stable_mosaic.version = 11 : i64} {
  func.func @kernel(%arg0: i32, %arg1: i32, %arg2: memref<128x128xi8, #tpu.memory_space<vmem>>, %arg3: memref<128x128xbf16, #tpu.memory_space<vmem>>, %arg4: memref<128x1xf32, #tpu.memory_space<vmem>>, %arg5: memref<1x128xf32, #tpu.memory_space<vmem>>, %arg6: memref<128x128xf32, #tpu.memory_space<vmem>>) attributes {dimension_semantics = [#tpu.dimension_semantics<parallel>, #tpu.dimension_semantics<arbitrary>], iteration_bounds = array<i64: 1, 1>, scalar_prefetch = 0 : i64, scratch_operands = 0 : i64, tpu.core_type = #tpu.core_type<tc>, window_params = [{transform_indices = @transform_0, window_bounds = array<i64: 128, 128>}, {pipeline_mode = #tpu.pipeline_mode<synchronous>, transform_indices = @transform_1, window_bounds = array<i64: 128, 128>}, {transform_indices = @transform_2, window_bounds = array<i64: 128, 1>}, {pipeline_mode = #tpu.pipeline_mode<synchronous>, transform_indices = @transform_3, window_bounds = array<i64: 1, 128>}, {transform_indices = @transform_4, window_bounds = array<i64: 128, 128>}]} {
    %c0_i32 = arith.constant 0 : i32
    %0 = arith.cmpi eq, %arg1, %c0_i32 : i32
    %1 = arith.extui %0 : i1 to i32
    %c0_i32_0 = arith.constant 0 : i32
    %2 = arith.cmpi ne, %1, %c0_i32_0 : i32
    scf.if %2 {
      %cst_9 = arith.constant 0.000000e+00 : f32
      %16 = vector.broadcast %cst_9 : f32 to vector<128x128xf32>
      %c0_10 = arith.constant 0 : index
      %c0_11 = arith.constant 0 : index
      %17 = vector.load %arg6[%c0_10, %c0_11] : memref<128x128xf32, #tpu.memory_space<vmem>>, vector<128x128xf32>
      tpu.vector_store %arg6[%c0_10, %c0_11], %16 {strides = array<i32>} : memref<128x128xf32, #tpu.memory_space<vmem>>, vector<128x128xf32>,
    } else {
    }
    %c128_i32 = arith.constant 128 : i32
    %3 = arith.muli %arg1, %c128_i32 : i32
    %4 = tpu.assume_multiple %3, 128 : i32
    %5 = arith.index_cast %4 : i32 to index
    %c0 = arith.constant 0 : index
    %6 = vector.load %arg3[%5, %c0] : memref<128x128xbf16, #tpu.memory_space<vmem>>, vector<128x128xbf16>
    %c0_1 = arith.constant 0 : index
    %c0_2 = arith.constant 0 : index
    %7 = vector.load %arg2[%c0_1, %c0_2] : memref<128x128xi8, #tpu.memory_space<vmem>>, vector<128x128xi8>
    %8 = arith.sitofp %7 : vector<128x128xi8> to vector<128x128xbf16>
    %c0_3 = arith.constant 0 : index
    %c0_4 = arith.constant 0 : index
    %9 = vector.load %arg6[%c0_3, %c0_4] : memref<128x128xf32, #tpu.memory_space<vmem>>, vector<128x128xf32>
    %cst = arith.constant dense<0.000000e+00> : vector<128x128xf32>
    %10 = tpu.matmul %8, %6, %cst {dimension_numbers = #tpu.dot_dimension_numbers<[1], [0], [0], [1], [0, 0, 1, 1], [], []>} : vector<128x128xbf16>, vector<128x128xbf16>, vector<128x128xf32> -> vector<128x128xf32>
    %11 = arith.addf %9, %10 : vector<128x128xf32>
    %c0_5 = arith.constant 0 : index
    %c0_6 = arith.constant 0 : index
    %12 = vector.load %arg6[%c0_5, %c0_6] : memref<128x128xf32, #tpu.memory_space<vmem>>, vector<128x128xf32>
    tpu.vector_store %arg6[%c0_5, %c0_6], %11 {strides = array<i32>} : memref<128x128xf32, #tpu.memory_space<vmem>>, vector<128x128xf32>,
    %c0_i32_7 = arith.constant 0 : i32
    %13 = arith.cmpi eq, %arg1, %c0_i32_7 : i32
    %14 = arith.extui %13 : i1 to i32
    %c0_i32_8 = arith.constant 0 : i32
    %15 = arith.cmpi ne, %14, %c0_i32_8 : i32
    scf.if %15 {
      %c0_9 = arith.constant 0 : index
      %c0_10 = arith.constant 0 : index
      %16 = vector.load %arg6[%c0_9, %c0_10] : memref<128x128xf32, #tpu.memory_space<vmem>>, vector<128x128xf32>
      %c0_11 = arith.constant 0 : index
      %c0_12 = arith.constant 0 : index
      %17 = vector.load %arg4[%c0_11, %c0_12] : memref<128x1xf32, #tpu.memory_space<vmem>>, vector<128x1xf32>
      %18 = vector.broadcast %17 : vector<128x1xf32> to vector<128x128xf32>
      %19 = arith.mulf %16, %18 : vector<128x128xf32>
      %c0_13 = arith.constant 0 : index
      %c0_14 = arith.constant 0 : index
      %20 = vector.load %arg5[%c0_13, %c0_14] : memref<1x128xf32, #tpu.memory_space<vmem>>, vector<1x128xf32>
      %21 = vector.broadcast %20 : vector<1x128xf32> to vector<128x128xf32>
      %22 = arith.addf %19, %21 : vector<128x128xf32>
      %c0_15 = arith.constant 0 : index
      %c0_16 = arith.constant 0 : index
      %23 = vector.load %arg6[%c0_15, %c0_16] : memref<128x128xf32, #tpu.memory_space<vmem>>, vector<128x128xf32>
      tpu.vector_store %arg6[%c0_15, %c0_16], %22 {strides = array<i32>} : memref<128x128xf32, #tpu.memory_space<vmem>>, vector<128x128xf32>,
    } else {
    }
    return
  }
  func.func @transform_0(%arg0: i32, %arg1: i32) -> (i32, i32) {
    %c0_i32 = arith.constant 0 : i32
    return %arg0, %arg1 : i32, i32
  }
  func.func @transform_1(%arg0: i32, %arg1: i32) -> (i32, i32) {
    %c0_i32 = arith.constant 0 : i32
    %c0_i32_0 = arith.constant 0 : i32
    %c0_i32_1 = arith.constant 0 : i32
    return %c0_i32, %c0_i32_0 : i32, i32
  }
  func.func @transform_2(%arg0: i32, %arg1: i32) -> (i32, i32) {
    %c0_i32 = arith.constant 0 : i32
    %c0_i32_0 = arith.constant 0 : i32
    return %arg0, %c0_i32 : i32, i32
  }
  func.func @transform_3(%arg0: i32, %arg1: i32) -> (i32, i32) {
    %c0_i32 = arith.constant 0 : i32
    %c0_i32_0 = arith.constant 0 : i32
    %c0_i32_1 = arith.constant 0 : i32
    return %c0_i32, %c0_i32_0 : i32, i32
  }
  func.func @transform_4(%arg0: i32, %arg1: i32) -> (i32, i32) {
    %c0_i32 = arith.constant 0 : i32
    %c0_i32_0 = arith.constant 0 : i32
    return %arg0, %c0_i32 : i32, i32
  }
}

</mosaic_0001>

<bundles_post_ra>
// kernel: tpu_custom_call.1
= control target key start
LH: loop header
LB: loop body
LE: loop exit
PB: predicated region body
PF: predicated region fallthrough
CT: control target
= control target key end

     0   :  { %v565_v2 = vmov 0   ;;  %s704_s0 = inlined_call_operand.vmem [shape: s8[128,128], index: 0, kind: input, shape index: {}]   ;;  %s705_s1 = inlined_call_operand.vmem [shape: bf16[128,128], index: 1, kind: input, shape index: {}]   ;;  %s706_s2 = inlined_call_operand.vmem [shape: f32[128,1], index: 2, kind: input, shape index: {}]   ;;  %s707_s3 = inlined_call_operand.vmem [shape: f32[1,128], index: 3, kind: input, shape index: {}]   ;;  %s708_s4 = inlined_call_operand.hbm [shape: f32[128,128], index: 4, kind: output, shape index: {}]  }
   0x1   :  { %v533_v0 = vld [vmem:[%s705_s1] sm:$0xff]   ;;  %v534_v1 = vld [vmem:[%s705_s1 + $0x8] sm:$0xff]   ;;  %532 = vset.pattern.permute.xlu1 %v565_v2  ;;  %531 = vset.pattern.permute.xlu0 %v565_v2  ;;  %v535_v3 = vld [vmem:[%s705_s1 + $0x10] sm:$0xff]  }
   0x2   :  { %478 = vmatprep.subr.bf16.mxu0 %v533_v0  ;;  %510 = vmatprep.subr.bf16.mxu1 %v533_v0  ;;  %v536_v4 = vld [vmem:[%s705_s1 + $0x18] sm:$0xff]   ;;  %v609_v5 = vld [vmem:[%s704_s0] sm:$0xff]  ;;  %v614_v6 = vld [vmem:[%s704_s0 + $0x10] sm:$0xff] }
   0x3   :  { %479 = vmatpush3.bf16.msra.mxu0 %v533_v0  ;;  %518 = vmatpush3.bf16.msra.mxu1 %v533_v0  ;;  %v64_v7 = vunpack.c.l.s8.bf16 %v609_v5  ;;  %v68_v8 = vunpack.c.l.s8.bf16 %v614_v6  ;;  %v286_v9 = vld [vmem:[%s706_s2 + $0x10] sm:$0xff]  ;;  %v284_v10 = vld [vmem:[%s706_s2] sm:$0xff]  ;;  %v287_v11 = vld [vmem:[%s706_s2 + $0x18] sm:$0xff] }
   0x4   :  { %480 = vmatprep.subr.bf16.mxu0 %v534_v1  ;;  %511 = vmatprep.subr.bf16.mxu1 %v534_v1  ;;  %v285_v12 = vld [vmem:[%s706_s2 + $0x8] sm:$0xff]  ;;  %v537_v13 = vld [vmem:[%s705_s1 + $0x20] sm:$0xff]  }
   0x5   :  { %312 = vperm.xlu1 %532, %v286_v9   ;;  %302 = vperm.xlu0 %531, %v284_v10  }
   0x6   :  { %494 = vmatprep.mubr.bf16.mxu0 %v64_v7  ;;  %502 = vmatprep.mubr.bf16.mxu1 %v68_v8 }
   0x7   :  { %481 = vmatpush3.bf16.msra.mxu0 %v534_v1  ;;  %519 = vmatpush3.bf16.msra.mxu1 %v534_v1 }
   0x8   :  { %482 = vmatprep.subr.bf16.mxu0 %v535_v3  ;;  %512 = vmatprep.subr.bf16.mxu1 %v535_v3 }
   0x9   :  { %317 = vperm.xlu1 %532, %v287_v11   ;;  %307 = vperm.xlu0 %531, %v285_v12  }
   0xb   :  { %483 = vmatpush3.bf16.msra.mxu0 %v535_v3  ;;  %520 = vmatpush3.bf16.msra.mxu1 %v535_v3 }
   0xc   :  { %484 = vmatprep.subr.bf16.mxu0 %v536_v4  ;;  %513 = vmatprep.subr.bf16.mxu1 %v536_v4 }
   0xd   :  { %9 = vsyncpa [#allocation3], 0  ;;  %v289_v14 = vld [vmem:[%s706_s2 + $0x28] sm:$0xff]  ;;  %v288_v15 = vld [vmem:[%s706_s2 + $0x20] sm:$0xff]  ;;  %v65_v27 = vunpack.c.h.s8.bf16 %v609_v5  ;;  %v69_v28 = vunpack.c.h.s8.bf16 %v614_v6 }
   0xe   :  { %v538_v16 = vld [vmem:[%s705_s1 + $0x28] sm:$0xff]   ;;  %327 = vperm.xlu1 %532, %v289_v14   ;;  %322 = vperm.xlu0 %531, %v288_v15   ;;  %v291_v17 = vld [vmem:[%s706_s2 + $0x38] sm:$0xff]  ;;  %v290_v18 = vld [vmem:[%s706_s2 + $0x30] sm:$0xff] }
   0xf   :  { %485 = vmatpush3.bf16.msra.mxu0 %v536_v4  ;;  %521 = vmatpush3.bf16.msra.mxu1 %v536_v4  ;;  %v539_v19 = vld [vmem:[%s705_s1 + $0x30] sm:$0xff]   ;;  %v293_v20 = vld [vmem:[%s706_s2 + $0x48] sm:$0xff]  ;;  %v292_v21 = vld [vmem:[%s706_s2 + $0x40] sm:$0xff] }
  0x10   :  { %486 = vmatprep.subr.bf16.mxu0 %v537_v13  ;;  %514 = vmatprep.subr.bf16.mxu1 %v537_v13  ;;  %v540_v22 = vld [vmem:[%s705_s1 + $0x38] sm:$0xff]   ;;  %v294_v24 = vld [vmem:[%s706_s2 + $0x50] sm:$0xff]  ;;  %v61_v25 = vld [vmem:[%s704_s0 + $0x8] sm:$0xff] }
  0x11   :  { %v295_v23 = vld [vmem:[%s706_s2 + $0x58] sm:$0xff]  ;;  %v66_v29 = vunpack.c.l.s8.bf16 %v61_v25  ;;  %v297_v31 = vld [vmem:[%s706_s2 + $0x68] sm:$0xff]  ;;  %v296_v32 = vld [vmem:[%s706_s2 + $0x60] sm:$0xff]  ;;  %v67_v35 = vunpack.c.h.s8.bf16 %v61_v25 }
  0x12   :  { %337 = vperm.xlu1 %532, %v291_v17   ;;  %332 = vperm.xlu0 %531, %v290_v18   ;;  %v63_v26 = vld [vmem:[%s704_s0 + $0x18] sm:$0xff]  ;;  %v298_v34 = vld [vmem:[%s706_s2 + $0x70] sm:$0xff]  ;;  %v461_v54 = vld [vmem:[%s707_s3] ss:$0 sm:$0xff]  ;;  %s566_s3 = smov [#allocation2]  }
  0x13   :  { %487 = vmatpush3.bf16.msra.mxu0 %v537_v13  ;;  %522 = vmatpush3.bf16.msra.mxu1 %v537_v13  ;;  %v70_v30 = vunpack.c.l.s8.bf16 %v63_v26  ;;  %v299_v33 = vld [vmem:[%s706_s2 + $0x78] sm:$0xff]  ;;  %v71_v36 = vunpack.c.h.s8.bf16 %v63_v26  ;;  %s440_s18 = sshll.u32 %s566_s3, 4  ;;  %s441_s18 = int_to_ptr.vmem [resolvable:$true] %s440_s18 }
  0x14   :  { %488 = vmatprep.subr.bf16.mxu0 %v538_v16  ;;  %515 = vmatprep.subr.bf16.mxu1 %v538_v16  ;;  %s541_s19 = scalar_lea.vmem %s441_s18, 2048  ;;  %p546_p1 = scmp.lt.s32.totalorder %s441_s18, %s441_s18 }
  0x15   :  { %p542_p0 = scmp.ne.s32.totalorder %s441_s18, %s541_s19  ;;  %p547_p2 = scmp.lt.s32.totalorder %s541_s19, %s541_s19 }
  0x16   :  { %347 = vperm.xlu1 %532, %v293_v20   ;;  %342 = vperm.xlu0 %531, %v292_v21  }
  0x17   :  { %489 = vmatpush3.bf16.msra.mxu0 %v538_v16  ;;  %523 = vmatpush3.bf16.msra.mxu1 %v538_v16  ;;  %p548_p3 = por %p547_p2, %p546_p1 }
  0x18   :  { %490 = vmatprep.subr.bf16.mxu0 %v539_v19  ;;  %516 = vmatprep.subr.bf16.mxu1 %v539_v19 }
  0x19   :  { %p549_p4 = pnand %p548_p3, %p542_p0 }
  0x1a   :  { %357 = vperm.xlu1 %532, %v295_v23   ;;  %352 = vperm.xlu0 %531, %v294_v24  }
  0x1b   :  { %491 = vmatpush3.bf16.msra.mxu0 %v539_v19  ;;  %524 = vmatpush3.bf16.msra.mxu1 %v539_v19 }
  0x1c   :  { %492 = vmatprep.subr.bf16.mxu0 %v540_v22  ;;  %517 = vmatprep.subr.bf16.mxu1 %v540_v22 }
  0x1e   :  { %367 = vperm.xlu1 %532, %v297_v31   ;;  %362 = vperm.xlu0 %531, %v296_v32  }
  0x1f   :  { %493 = vmatpush3.bf16.msra.mxu0 %v540_v22  ;;  %525 = vmatpush3.bf16.msra.mxu1 %v540_v22 }
  0x22   :  { %495 = vmatmul.mubr.bf16.vlgmr.msra.gmra.mrb[0].mxu0 %v65_v27  ;;  %503 = vmatmul.mubr.bf16.vlgmr.msra.gmra.mrb[0].mxu1 %v69_v28 }
  0x23   :  { %498 = vmatprep.mubr.bf16.mxu0 %v66_v29  ;;  %506 = vmatprep.mubr.bf16.mxu1 %v70_v30 }
  0x24   :  { %377 = vperm.xlu1 %532, %v299_v33   ;;  %372 = vperm.xlu0 %531, %v298_v34  }
  0x2a   :  { %499 = vmatmul.mubr.bf16.gmra.mrb[4].mxu0 %v67_v35  ;;  %507 = vmatmul.mubr.bf16.gmra.mrb[4].mxu1 %v71_v36 }
  0x84   :  { %v303_v37 = vpop.permute.xlu0 %302  ;;  %v313_v38 = vpop.permute.xlu1 %312 }
  0x88   :  { %v308_v39 = vpop.permute.xlu0 %307  ;;  %v318_v40 = vpop.permute.xlu1 %317 }
  0x8d   :  { %v323_v41 = vpop.permute.xlu0 %322  ;;  %v686_v42 = vpop.permute.xlu1 %327 }
  0x91   :  { %v333_v43 = vpop.permute.xlu0 %332  ;;  %v338_v44 = vpop.permute.xlu1 %337 }
  0x95   :  { %v343_v45 = vpop.permute.xlu0 %342  ;;  %v348_v46 = vpop.permute.xlu1 %347 }
  0x99   :  { %v353_v47 = vpop.permute.xlu0 %352  ;;  %v358_v48 = vpop.permute.xlu1 %357 }
  0x9d   :  { %v363_v49 = vpop.permute.xlu0 %362  ;;  %v368_v3 = vpop.permute.xlu1 %367 }
  0xa3   :  { %v373_v8 = vpop.permute.xlu0 %372  ;;  %v378_v23 = vpop.permute.xlu1 %377 }
  0xf5   :  { %v496_v50 = vpop.f32.mrb[0].mxu0  ;;  %v504_v51 = vpop.f32.mrb[0].mxu1 }
  0xf6   :  { %v170_v52 = vpop.f32.mrb[1].mxu0  ;;  %v202_v53 = vpop.f32.mrb[1].mxu1  ;;  %v382_v57 = vmul.f32 %v496_v50, %v313_v38  ;;  %v390_v58 = vmul.f32 %v504_v51, %v353_v47 }
  0xf7   :  { %v497_v55 = vpop.f32.mrb[2].mxu0  ;;  %v505_v56 = vpop.f32.mrb[2].mxu1  ;;  %v380_v61 = vmul.f32 %v303_v37, %v170_v52  ;;  %v388_v62 = vmul.f32 %v343_v45, %v202_v53 }
  0xf8   :  { %v173_v59 = vpop.f32.mrb[3].mxu0  ;;  %v205_v60 = vpop.f32.mrb[3].mxu1  ;;  %v405_v63 = vadd.f32 %v461_v54, %v382_v57  ;;  %v413_v0 = vadd.f32 %v461_v54, %v390_v58  ;;  %v383_v1 = vmul.f32 %v497_v55, %v318_v40  ;;  %v391_v2 = vmul.f32 %v505_v56, %v358_v48 }
  0xf9   :  { %v403_v4 = vadd.f32 %v461_v54, %v380_v61  ;;  %v411_v5 = vadd.f32 %v461_v54, %v388_v62  ;;  %v381_v6 = vmul.f32 %v308_v39, %v173_v59  ;;  %v389_v7 = vmul.f32 %v348_v46, %v205_v60 }
  0xfa   :  { %421 = vst [vmem:[#allocation2 + $0x10] sm:$0xff] %v405_v63  ;;  %429 = vst [vmem:[#allocation2 + $0x50] sm:$0xff] %v413_v0  ;;  %v406_v9 = vadd.f32 %v461_v54, %v383_v1  ;;  %v414_v10 = vadd.f32 %v461_v54, %v391_v2 }
  0xfb   :  { %419 = vst [vmem:[#allocation2] sm:$0xff] %v403_v4  ;;  %427 = vst [vmem:[#allocation2 + $0x40] sm:$0xff] %v411_v5  ;;  %v404_v11 = vadd.f32 %v461_v54, %v381_v6  ;;  %v412_v12 = vadd.f32 %v461_v54, %v389_v7 }
  0xfc   :  { %422 = vst [vmem:[#allocation2 + $0x18] sm:$0xff] %v406_v9  ;;  %430 = vst [vmem:[#allocation2 + $0x58] sm:$0xff] %v414_v10 }
  0xfd   :  { %v500_v13 = vpop.f32.mrb[4].mxu0  ;;  %v508_v14 = vpop.f32.mrb[4].mxu1  ;;  %420 = vst [vmem:[#allocation2 + $0x8] sm:$0xff] %v404_v11  ;;  %428 = vst [vmem:[#allocation2 + $0x48] sm:$0xff] %v412_v12 }
  0xfe   :  { %v186_v15 = vpop.f32.mrb[5].mxu0  ;;  %v218_v16 = vpop.f32.mrb[5].mxu1  ;;  %v386_v19 = vmul.f32 %v500_v13, %v333_v43  ;;  %v394_v20 = vmul.f32 %v508_v14, %v373_v8 }
  0xff   :  { %v501_v17 = vpop.f32.mrb[6].mxu0  ;;  %v509_v18 = vpop.f32.mrb[6].mxu1  ;;  %v384_v24 = vmul.f32 %v323_v41, %v186_v15  ;;  %v392_v25 = vmul.f32 %v363_v49, %v218_v16 }
 0x100   :  { %v189_v21 = vpop.f32.mrb[7].mxu0  ;;  %v221_v22 = vpop.f32.mrb[7].mxu1  ;;  %v409_v26 = vadd.f32 %v461_v54, %v386_v19  ;;  %v417_v27 = vadd.f32 %v461_v54, %v394_v20  ;;  %v387_v28 = vmul.f32 %v501_v17, %v338_v44  ;;  %v395_v29 = vmul.f32 %v509_v18, %v378_v23 }
 0x101   :  { %v407_v30 = vadd.f32 %v461_v54, %v384_v24  ;;  %v415_v31 = vadd.f32 %v461_v54, %v392_v25  ;;  %v385_v32 = vmul.f32 %v686_v42, %v189_v21  ;;  %v393_v33 = vmul.f32 %v368_v3, %v221_v22 }
 0x102   :  { %425 = vst [vmem:[#allocation2 + $0x30] sm:$0xff] %v409_v26  ;;  %433 = vst [vmem:[#allocation2 + $0x70] sm:$0xff] %v417_v27  ;;  %v410_v34 = vadd.f32 %v461_v54, %v387_v28  ;;  %v418_v35 = vadd.f32 %v461_v54, %v395_v29 }
 0x103   :  { %423 = vst [vmem:[#allocation2 + $0x20] sm:$0xff] %v407_v30  ;;  %431 = vst [vmem:[#allocation2 + $0x60] sm:$0xff] %v415_v31  ;;  %v408_v36 = vadd.f32 %v461_v54, %v385_v32  ;;  %v416_v37 = vadd.f32 %v461_v54, %v393_v33 }
 0x104   :  { %426 = vst [vmem:[#allocation2 + $0x38] sm:$0xff] %v410_v34  ;;  %434 = vst [vmem:[#allocation2 + $0x78] sm:$0xff] %v418_v35 }
 0x105   :  { %424 = vst [vmem:[#allocation2 + $0x28] sm:$0xff] %v408_v36  ;;  %432 = vst [vmem:[#allocation2 + $0x68] sm:$0xff] %v416_v37 }
 0x106   :  { %552 = shalt.err (!%p549_p4)
}
 0x107   :  { %s553_s22 = scalar_lea.hbm %s708_s4, 2048 }
 0x108   :  { %p554_p5 = scmp.ne.s32.totalorder %s708_s4, %s553_s22  ;;  %p557_p6 = scmp.lt.u32.totalorder %s553_s22, %s708_s4 }
 0x10a   :  { %p559_p7 = pnand %p557_p6, %p554_p5 }
 0x10c   :  { %562 = shalt.err (!%p559_p7)
}
 0x10d   :  { %s567_s27 = smov 128   ;;  %s568_s28 = smov 8  }
 0x10e   :  { %446 = dma.vmem_to_hbm [thread:$0]  %s441_s18, 2048, %s708_s4, [#allocation3], %s567_s27, %s567_s27, %s568_s28  }
 0x10f   :  { %563 = dma.done.wait [#allocation3], 2048  }
 0x110   :  { %564 = vsyncadd [#allocation3], 4294965248 }
 0x111   :  { %450 = vsyncpa [#allocation3], 1 }

</bundles_post_ra>
